<compile_context>
chip_gen: v5e
topology: v5e:2x2
jax: 0.10.0
libtpu: 0.0.40
codegen_flags: <defaults>
</compile_context>

<pallas_src>
import jax
import jax.numpy as jnp
from jax.experimental import pallas as pl
from jax.experimental.pallas import tpu as pltpu

LATENT = 32
HIDDEN = 256


# ---------------------------------------------------------------------------
# Parameter packing: consolidate all weights/biases into 3 contiguous blobs.
# ---------------------------------------------------------------------------
def _pack_sublanes(entries, width, dtype, row_align):
    """Stack 2-D arrays along sublanes into one (R, width) blob.

    Each entry is lane-padded (with zeros) to `width`; each entry's row count
    is padded to a multiple of `row_align` so every static in-kernel slice
    start stays tile-aligned.  Returns (blob, {name: (row_offset, n_rows)}).
    """
    blocks, offs, r = [], {}, 0
    for name, m in entries:
        m = jnp.asarray(m, jnp.float32)
        n, w = m.shape
        row_pad = (-n) % row_align
        blocks.append(jnp.pad(m, ((0, row_pad), (0, width - w))))
        offs[name] = (r, n)
        r += n + row_pad
    return jnp.concatenate(blocks, axis=0).astype(dtype), offs


# ---------------------------------------------------------------------------
# Deterministic parameter init (PyTorch Linear default: U(-1/sqrt(fan_in), ..))
# Weights stored transposed as (in, out) so y = x @ W + b.
# ---------------------------------------------------------------------------
def init_linear(key, fan_in, fan_out):
    kw, kb = jax.random.split(key)
    bound = 1.0 / float(fan_in) ** 0.5
    w = jax.random.uniform(kw, (fan_in, fan_out), jnp.float32, -bound, bound)
    b = jax.random.uniform(kb, (fan_out,), jnp.float32, -bound, bound)
    return w, b


def init_icm_params(key, state_dim_plus10, action_dim_eff, latent=LATENT, hidden=HIDDEN):
    S = state_dim_plus10
    keys = jax.random.split(key, 16)
    p = {}
    # ForwardModel.state_encoder: Linear,Tanh,Linear,Tanh,Linear,Linear
    p["fm_enc"] = [init_linear(keys[0], S, latent),
                   init_linear(keys[1], latent, latent),
                   init_linear(keys[2], latent, latent),
                   init_linear(keys[3], latent, latent)]
    # ForwardModel.model: Linear(latent+act,256),Tanh,Linear(256,256),Tanh,Linear(256,latent)
    p["fm_model"] = [init_linear(keys[4], latent + action_dim_eff, hidden),
                     init_linear(keys[5], hidden, hidden),
                     init_linear(keys[6], hidden, latent)]
    # InverseModel.state_encoder: Linear,Tanh,Linear,Tanh,Linear
    p["inv_enc"] = [init_linear(keys[7], S, latent),
                    init_linear(keys[8], latent, latent),
                    init_linear(keys[9], latent, latent)]
    # InverseModel.model: Linear(2*latent,256),Tanh,Linear(256,256),Tanh,Linear(256,act),Softmax
    p["inv_model"] = [init_linear(keys[10], latent * 2, hidden),
                      init_linear(keys[11], hidden, hidden),
                      init_linear(keys[12], hidden, action_dim_eff)]
    # ICMModule.state_encoder: Linear,Tanh,Linear,Tanh,Linear
    p["icm_enc"] = [init_linear(keys[13], S, latent),
                    init_linear(keys[14], latent, latent),
                    init_linear(keys[15], latent, latent)]
    return p


# ---------------------------------------------------------------------------
# One-time param prep (off the hot path): fold, merge, blob-pack, bf16-cast.
# ---------------------------------------------------------------------------
def prepare_icm_params(p, action_dim_eff, latent=LATENT, hidden=HIDDEN):
    f32, bf16 = jnp.float32, jnp.bfloat16
    L, A = latent, action_dim_eff
    fm_enc, fm_model, icm_enc = p["fm_enc"], p["fm_model"], p["icm_enc"]

    # Fold ForwardModel.state_encoder Linear #4 into Linear #3 (no activation
    # between them): exact identity, performed in f32 before the bf16 cast.
    w3f, b3f = fm_enc[2]
    w4f, b4f = fm_enc[3]
    fm_w34 = w3f @ w4f
    fm_b34 = b3f @ w4f + b4f

    # Merged lane-wise state encoders: lanes [0:L]=ForwardModel, [L:2L]=ICM,
    # (+ [2L:3L]=InverseModel only when A > 1 — for A==1 that branch is dead).
    enc_l1 = [fm_enc[0], icm_enc[0]]
    enc_l2 = [fm_enc[1], icm_enc[1]]
    enc_l3 = [(fm_w34, fm_b34), icm_enc[2]]
    if A > 1:
        inv_enc = p["inv_enc"]
        enc_l1.append(inv_enc[0])
        enc_l2.append(inv_enc[1])
        enc_l3.append(inv_enc[2])
    enc_w = L * len(enc_l1)

    def blockdiag(mats):
        n = len(mats)
        z = jnp.zeros((L, L), f32)
        return jnp.block([[mats[i] if j == i else z for j in range(n)] for i in range(n)])

    w1m = jnp.concatenate([w for w, _ in enc_l1], axis=1)           # (S, enc_w)
    w2m = blockdiag([w for w, _ in enc_l2])                         # (enc_w, enc_w)
    w3m = blockdiag([w for w, _ in enc_l3])                         # (enc_w, enc_w)
    b1m = jnp.concatenate([b for _, b in enc_l1]).reshape(1, -1)
    b2m = jnp.concatenate([b for _, b in enc_l2]).reshape(1, -1)
    b3m = jnp.concatenate([b for _, b in enc_l3]).reshape(1, -1)

    fm_w1, fm_b1 = fm_model[0]
    fm_w2, fm_b2 = fm_model[1]
    fm_w3, fm_b3 = fm_model[2]

    # Narrow (enc_w-lane) bf16 blob: merged encoder chain + fm output layer.
    narrow = [("w1m", w1m), ("w2m", w2m), ("w3m", w3m), ("fm_w3", fm_w3)]
    wn, n_offs = _pack_sublanes(narrow, enc_w, bf16, 16)

    # Wide (256-lane) bf16 blob: the big hidden-layer weights.
    wide = [("fm_w1s", fm_w1[:L]), ("fm_w2", fm_w2)]
    if A > 1:
        inv_model = p["inv_model"]
        inv_w1 = inv_model[0][0]
        wide += [("fm_w1a", fm_w1[L:]),
                 ("inv_w1a", inv_w1[:L]), ("inv_w1b", inv_w1[L:]),
                 ("inv_w2", inv_model[1][0]), ("inv_w3", inv_model[2][0])]
    ww, w_offs = _pack_sublanes(wide, hidden, bf16, 16)

    # f32 bias blob: one row per bias-like vector, lane-padded to 256.
    biases = [("b1m", b1m), ("b2m", b2m), ("b3m", b3m),
              ("fm_b1", fm_b1.reshape(1, -1)), ("fm_b2", fm_b2.reshape(1, -1)),
              ("fm_b3", fm_b3.reshape(1, -1))]
    if A == 1:
        biases.append(("fm_w1a", fm_w1[L:]))     # (1,256) action row; used as broadcast-mul
    else:
        inv_model = p["inv_model"]
        biases += [("inv_b1", inv_model[0][1].reshape(1, -1)),
                   ("inv_b2", inv_model[1][1].reshape(1, -1)),
                   ("inv_b3", inv_model[2][1].reshape(1, -1))]
    bb, b_offs = _pack_sublanes(biases, hidden, f32, 1)
    bb = jnp.pad(bb, ((0, (-bb.shape[0]) % 8), (0, 0)))

    cfg = {"L": L, "A": A, "enc_w": enc_w,
           "n_offs": n_offs, "w_offs": w_offs, "b_offs": b_offs}
    return cfg, (wn, ww, bb)


# ---------------------------------------------------------------------------
# Fused kernel: whole ICMModule.forward in one gridless invocation.
# ---------------------------------------------------------------------------
def _make_icm_kernel(cfg):
    L, A, enc_w = cfg["L"], cfg["A"], cfg["enc_w"]
    n_offs, w_offs, b_offs = cfg["n_offs"], cfg["w_offs"], cfg["b_offs"]
    f32, bf16 = jnp.float32, jnp.bfloat16

    def kernel(state_ref, next_state_ref, act_ref, wn_ref, ww_ref, bb_ref,
               pns_ref, pa_ref, sl_ref, nsl_ref):
        B = state_ref.shape[0]

        def narrow_w(name):
            r, n = n_offs[name]
            return wn_ref[r:r + n, :]

        def wide_w(name):
            r, n = w_offs[name]
            return ww_ref[r:r + n, :]

        bb = bb_ref[...]                                            # small, load once

        def bias(name, width):
            r = b_offs[name][0]
            return bb[r:r + 1, 0:width]

        def mm(a, w):
            # bf16 MXU operands, f32 accumulation (v5e/v6e/v7x safe).
            return jnp.dot(a.astype(bf16), w, preferred_element_type=f32)

        # --- merged state encoders on the stacked (2B, S) batch --------------
        # rows [0:B] = state, [B:2B] = next_state (concat happens in VMEM).
        x = jnp.concatenate([state_ref[...], next_state_ref[...]], axis=0).astype(f32)
        h = jnp.tanh(mm(x, narrow_w("w1m")) + bias("b1m", enc_w))
        h = jnp.tanh(mm(h, narrow_w("w2m")) + bias("b2m", enc_w))
        enc = mm(h, narrow_w("w3m")) + bias("b3m", enc_w)           # (2B, enc_w)

        fm_lat = enc[:B, 0:L]            # ForwardModel.state_encoder (Linear #3/#4 folded)
        sl_ref[...] = enc[:B, L:2 * L]   # ICMModule.state_encoder(state)
        nsl_ref[...] = enc[B:, L:2 * L]  # ICMModule.state_encoder(next_state)

        # --- ForwardModel.model: cat([latent, action]) @ W1 as split matmul --
        act = act_ref[...].astype(f32)                              # (B, A)
        if A == 1:
            act_part = act * bias("fm_w1a", HIDDEN)                 # (B,1)*(1,H) broadcast
        else:
            act_part = mm(act, wide_w("fm_w1a"))
        h = jnp.tanh(mm(fm_lat, wide_w("fm_w1s")) + act_part + bias("fm_b1", HIDDEN))
        h = jnp.tanh(mm(h, wide_w("fm_w2")) + bias("fm_b2", HIDDEN))
        pns = mm(h, narrow_w("fm_w3"))                              # (B, enc_w); lanes [0:L] valid
        pns_ref[...] = pns[:, 0:L] + bias("fm_b3", L)

        # --- InverseModel ----------------------------------------------------
        if A == 1:
            # Softmax over a single logit is identically 1.0 (discrete config):
            # the whole InverseModel branch is dead; its weights never leave HBM.
            pa_ref[...] = jnp.ones(pa_ref.shape, f32)
        else:
            s_lat = enc[:B, 2 * L:3 * L]
            ns_lat = enc[B:, 2 * L:3 * L]
            h = jnp.tanh(mm(s_lat, wide_w("inv_w1a")) + mm(ns_lat, wide_w("inv_w1b"))
                         + bias("inv_b1", HIDDEN))
            h = jnp.tanh(mm(h, wide_w("inv_w2")) + bias("inv_b2", HIDDEN))
            logits = mm(h, wide_w("inv_w3"))[:, 0:A] + bias("inv_b3", A)
            e = jnp.exp(logits - jnp.max(logits, axis=-1, keepdims=True))
            pa_ref[...] = e / jnp.sum(e, axis=-1, keepdims=True)

    return kernel


def make_icm_forward(cfg):
    """Build the jit-able forward: (wn, ww, bb, state, next_state, action) -> 4 outputs."""
    kernel = _make_icm_kernel(cfg)
    L, A = cfg["L"], cfg["A"]
    vmem = pltpu.MemorySpace.VMEM

    def icm_forward(wn, ww, bb, state, next_state, action):
        B = state.shape[0]
        act2d = action.reshape(B, -1)     # torch.unsqueeze(action, 1) (discrete) / (B, A)
        out_shape = (
            jax.ShapeDtypeStruct((B, L), jnp.float32),   # pred_next_state
            jax.ShapeDtypeStruct((B, A), jnp.float32),   # pred_action
            jax.ShapeDtypeStruct((B, L), jnp.float32),   # state_latent
            jax.ShapeDtypeStruct((B, L), jnp.float32),   # next_state_latent
        )
        # Gridless single-shot call: no pipeline bookkeeping / double buffering;
        # every operand lands in VMEM once (<300 KB, far under any VMEM limit).
        return pl.pallas_call(
            kernel,
            out_shape=out_shape,
            in_specs=[pl.BlockSpec(memory_space=vmem) for _ in range(6)],
            out_specs=tuple(pl.BlockSpec(memory_space=vmem) for _ in range(4)),
        )(state, next_state, act2d, wn, ww, bb)

    return icm_forward


# ---------------------------------------------------------------------------
# Pure-JAX reference of ICMModule.forward (for a correctness check only).
# ---------------------------------------------------------------------------
def _icm_forward_ref(p, state, next_state, action):
    def enc3(layers, x):
        (w1, b1), (w2, b2), (w3, b3) = layers
        h = jnp.tanh(x @ w1 + b1)
        h = jnp.tanh(h @ w2 + b2)
        return h @ w3 + b3

    # ForwardModel
    (w1, b1), (w2, b2), (w3, b3), (w4, b4) = p["fm_enc"]
    h = jnp.tanh(state @ w1 + b1)
    h = jnp.tanh(h @ w2 + b2)
    fm_lat = (h @ w3 + b3) @ w4 + b4
    sa = jnp.concatenate([fm_lat, action.reshape(state.shape[0], -1)], axis=1)
    (mw1, mb1), (mw2, mb2), (mw3, mb3) = p["fm_model"]
    h = jnp.tanh(sa @ mw1 + mb1)
    h = jnp.tanh(h @ mw2 + mb2)
    pred_next_state = h @ mw3 + mb3

    # InverseModel
    s_lat = enc3(p["inv_enc"], state)
    ns_lat = enc3(p["inv_enc"], next_state)
    ss = jnp.concatenate([s_lat, ns_lat], axis=1)
    (iw1, ib1), (iw2, ib2), (iw3, ib3) = p["inv_model"]
    h = jnp.tanh(ss @ iw1 + ib1)
    h = jnp.tanh(h @ iw2 + ib2)
    pred_action = jax.nn.softmax(h @ iw3 + ib3, axis=-1)

    # ICMModule.state_encoder
    state_latent = enc3(p["icm_enc"], state)
    next_state_latent = enc3(p["icm_enc"], next_state)
    return pred_next_state, pred_action, state_latent, next_state_latent


if __name__ == "__main__":
    # ICMModule(state_dim=6, action_dim=4, has_continuous_action_space=False, action_std_init=0.6)
    state_dim = 6
    S = state_dim + 10              # ICMModule adds +10 internally
    action_dim = 4
    has_continuous_action_space = False
    action_dim_eff = action_dim if has_continuous_action_space else 1
    B = 8

    root = jax.random.PRNGKey(0)
    k_params, k_s, k_ns, k_a = jax.random.split(root, 4)

    raw_params = init_icm_params(k_params, S, action_dim_eff)
    cfg, blobs = prepare_icm_params(raw_params, action_dim_eff)

    state = jax.random.normal(k_s, (B, S), jnp.float32)
    next_state = jax.random.normal(k_ns, (B, S), jnp.float32)
    action = jax.random.randint(k_a, (B,), 0, action_dim).astype(jnp.float32)

    fwd = jax.jit(make_icm_forward(cfg))
    outs = jax.block_until_ready(fwd(*blobs, state, next_state, action))

    pred_next_state, pred_action, state_latent, next_state_latent = outs
    assert pred_next_state.shape == (B, LATENT)
    assert pred_action.shape == (B, action_dim_eff)
    assert state_latent.shape == (B, LATENT)
    assert next_state_latent.shape == (B, LATENT)
    for t in outs:
        assert bool(jnp.all(jnp.isfinite(t)))
    # discrete case: softmax over a single logit -> all ones
    assert bool(jnp.allclose(pred_action, 1.0))

    # Numerical check against the unfused f32 reference (bf16 weights -> loose tol).
    refs = _icm_forward_ref(raw_params, state, next_state, action)
    for got, want in zip(outs, refs):
        assert bool(jnp.max(jnp.abs(got - want)) < 5e-2), "kernel/reference mismatch"

    print("KERNEL_OK")
</pallas_src>

<mosaic_0001>
module attributes {stable_mosaic.version = 11 : i64} {
  func.func @kernel(%arg0: memref<8x16xf32, #tpu.memory_space<vmem>>, %arg1: memref<8x16xf32, #tpu.memory_space<vmem>>, %arg2: memref<8x1xf32, #tpu.memory_space<vmem>>, %arg3: memref<400x64xbf16, #tpu.memory_space<vmem>>, %arg4: memref<288x256xbf16, #tpu.memory_space<vmem>>, %arg5: memref<8x256xf32, #tpu.memory_space<vmem>>, %arg6: memref<8x32xf32, #tpu.memory_space<vmem>>, %arg7: memref<8x1xf32, #tpu.memory_space<vmem>>, %arg8: memref<8x32xf32, #tpu.memory_space<vmem>>, %arg9: memref<8x32xf32, #tpu.memory_space<vmem>>) attributes {dimension_semantics = [], scalar_prefetch = 0 : i64, scratch_operands = 0 : i64, tpu.core_type = #tpu.core_type<tc>} {
    %c0 = arith.constant 0 : index
    %c0_0 = arith.constant 0 : index
    %0 = vector.load %arg5[%c0, %c0_0] : memref<8x256xf32, #tpu.memory_space<vmem>>, vector<8x256xf32>
    %c0_1 = arith.constant 0 : index
    %c0_2 = arith.constant 0 : index
    %1 = vector.load %arg0[%c0_1, %c0_2] : memref<8x16xf32, #tpu.memory_space<vmem>>, vector<8x16xf32>
    %c0_3 = arith.constant 0 : index
    %c0_4 = arith.constant 0 : index
    %2 = vector.load %arg1[%c0_3, %c0_4] : memref<8x16xf32, #tpu.memory_space<vmem>>, vector<8x16xf32>
    %3 = tpu.concatenate %1, %2 in 0 : vector<8x16xf32>, vector<8x16xf32> -> vector<16x16xf32>
    %c0_5 = arith.constant 0 : index
    %c0_6 = arith.constant 0 : index
    %4 = vector.load %arg3[%c0_5, %c0_6] : memref<400x64xbf16, #tpu.memory_space<vmem>>, vector<16x64xbf16>
    %5 = arith.truncf %3 : vector<16x16xf32> to vector<16x16xbf16>
    %cst = arith.constant dense<0.000000e+00> : vector<16x64xf32>
    %6 = tpu.matmul %5, %4, %cst {dimension_numbers = #tpu.dot_dimension_numbers<[1], [0], [0], [1], [0, 0, 1, 1], [], []>} : vector<16x16xbf16>, vector<16x64xbf16>, vector<16x64xf32> -> vector<16x64xf32>
    %7 = vector.extract_strided_slice %0 {offsets = [0, 0], sizes = [1, 64], strides = [1, 1]} : vector<8x256xf32> to vector<1x64xf32>
    %8 = vector.broadcast %7 : vector<1x64xf32> to vector<16x64xf32>
    %9 = arith.addf %6, %8 : vector<16x64xf32>
    %10 = math.tanh %9 : vector<16x64xf32>
    %c16 = arith.constant 16 : index
    %c0_7 = arith.constant 0 : index
    %11 = vector.load %arg3[%c16, %c0_7] : memref<400x64xbf16, #tpu.memory_space<vmem>>, vector<64x64xbf16>
    %12 = arith.truncf %10 : vector<16x64xf32> to vector<16x64xbf16>
    %cst_8 = arith.constant dense<0.000000e+00> : vector<16x64xf32>
    %13 = tpu.matmul %12, %11, %cst_8 {dimension_numbers = #tpu.dot_dimension_numbers<[1], [0], [0], [1], [0, 0, 1, 1], [], []>} : vector<16x64xbf16>, vector<64x64xbf16>, vector<16x64xf32> -> vector<16x64xf32>
    %14 = vector.extract_strided_slice %0 {offsets = [1, 0], sizes = [1, 64], strides = [1, 1]} : vector<8x256xf32> to vector<1x64xf32>
    %15 = vector.broadcast %14 : vector<1x64xf32> to vector<16x64xf32>
    %16 = arith.addf %13, %15 : vector<16x64xf32>
    %17 = math.tanh %16 : vector<16x64xf32>
    %c80 = arith.constant 80 : index
    %c0_9 = arith.constant 0 : index
    %18 = vector.load %arg3[%c80, %c0_9] : memref<400x64xbf16, #tpu.memory_space<vmem>>, vector<64x64xbf16>
    %19 = arith.truncf %17 : vector<16x64xf32> to vector<16x64xbf16>
    %cst_10 = arith.constant dense<0.000000e+00> : vector<16x64xf32>
    %20 = tpu.matmul %19, %18, %cst_10 {dimension_numbers = #tpu.dot_dimension_numbers<[1], [0], [0], [1], [0, 0, 1, 1], [], []>} : vector<16x64xbf16>, vector<64x64xbf16>, vector<16x64xf32> -> vector<16x64xf32>
    %21 = vector.extract_strided_slice %0 {offsets = [2, 0], sizes = [1, 64], strides = [1, 1]} : vector<8x256xf32> to vector<1x64xf32>
    %22 = vector.broadcast %21 : vector<1x64xf32> to vector<16x64xf32>
    %23 = arith.addf %20, %22 : vector<16x64xf32>
    %24 = vector.extract_strided_slice %23 {offsets = [0, 0], sizes = [8, 32], strides = [1, 1]} : vector<16x64xf32> to vector<8x32xf32>
    %25 = vector.extract_strided_slice %23 {offsets = [0, 32], sizes = [8, 32], strides = [1, 1]} : vector<16x64xf32> to vector<8x32xf32>
    %c0_11 = arith.constant 0 : index
    %c0_12 = arith.constant 0 : index
    %26 = vector.load %arg8[%c0_11, %c0_12] : memref<8x32xf32, #tpu.memory_space<vmem>>, vector<8x32xf32>
    tpu.vector_store %arg8[%c0_11, %c0_12], %25 {strides = array<i32>} : memref<8x32xf32, #tpu.memory_space<vmem>>, vector<8x32xf32>,
    %27 = vector.extract_strided_slice %23 {offsets = [8, 32], sizes = [8, 32], strides = [1, 1]} : vector<16x64xf32> to vector<8x32xf32>
    %c0_13 = arith.constant 0 : index
    %c0_14 = arith.constant 0 : index
    %28 = vector.load %arg9[%c0_13, %c0_14] : memref<8x32xf32, #tpu.memory_space<vmem>>, vector<8x32xf32>
    tpu.vector_store %arg9[%c0_13, %c0_14], %27 {strides = array<i32>} : memref<8x32xf32, #tpu.memory_space<vmem>>, vector<8x32xf32>,
    %c0_15 = arith.constant 0 : index
    %c0_16 = arith.constant 0 : index
    %29 = vector.load %arg2[%c0_15, %c0_16] : memref<8x1xf32, #tpu.memory_space<vmem>>, vector<8x1xf32>
    %30 = vector.extract_strided_slice %0 {offsets = [6, 0], sizes = [1, 256], strides = [1, 1]} : vector<8x256xf32> to vector<1x256xf32>
    %31 = vector.broadcast %29 : vector<8x1xf32> to vector<8x256xf32>
    %32 = vector.broadcast %30 : vector<1x256xf32> to vector<8x256xf32>
    %33 = arith.mulf %31, %32 : vector<8x256xf32>
    %c0_17 = arith.constant 0 : index
    %c0_18 = arith.constant 0 : index
    %34 = vector.load %arg4[%c0_17, %c0_18] : memref<288x256xbf16, #tpu.memory_space<vmem>>, vector<32x256xbf16>
    %35 = arith.truncf %24 : vector<8x32xf32> to vector<8x32xbf16>
    %cst_19 = arith.constant dense<0.000000e+00> : vector<8x256xf32>
    %36 = tpu.matmul %35, %34, %cst_19 {dimension_numbers = #tpu.dot_dimension_numbers<[1], [0], [0], [1], [0, 0, 1, 1], [], []>} : vector<8x32xbf16>, vector<32x256xbf16>, vector<8x256xf32> -> vector<8x256xf32>
    %37 = arith.addf %36, %33 : vector<8x256xf32>
    %38 = vector.extract_strided_slice %0 {offsets = [3, 0], sizes = [1, 256], strides = [1, 1]} : vector<8x256xf32> to vector<1x256xf32>
    %39 = vector.broadcast %38 : vector<1x256xf32> to vector<8x256xf32>
    %40 = arith.addf %37, %39 : vector<8x256xf32>
    %41 = math.tanh %40 : vector<8x256xf32>
    %c32 = arith.constant 32 : index
    %c0_20 = arith.constant 0 : index
    %42 = vector.load %arg4[%c32, %c0_20] : memref<288x256xbf16, #tpu.memory_space<vmem>>, vector<256x256xbf16>
    %43 = arith.truncf %41 : vector<8x256xf32> to vector<8x256xbf16>
    %cst_21 = arith.constant dense<0.000000e+00> : vector<8x256xf32>
    %44 = tpu.matmul %43, %42, %cst_21 {dimension_numbers = #tpu.dot_dimension_numbers<[1], [0], [0], [1], [0, 0, 1, 1], [], []>} : vector<8x256xbf16>, vector<256x256xbf16>, vector<8x256xf32> -> vector<8x256xf32>
    %45 = vector.extract_strided_slice %0 {offsets = [4, 0], sizes = [1, 256], strides = [1, 1]} : vector<8x256xf32> to vector<1x256xf32>
    %46 = vector.broadcast %45 : vector<1x256xf32> to vector<8x256xf32>
    %47 = arith.addf %44, %46 : vector<8x256xf32>
    %48 = math.tanh %47 : vector<8x256xf32>
    %c144 = arith.constant 144 : index
    %c0_22 = arith.constant 0 : index
    %49 = vector.load %arg3[%c144, %c0_22] : memref<400x64xbf16, #tpu.memory_space<vmem>>, vector<256x64xbf16>
    %50 = arith.truncf %48 : vector<8x256xf32> to vector<8x256xbf16>
    %cst_23 = arith.constant dense<0.000000e+00> : vector<8x64xf32>
    %51 = tpu.matmul %50, %49, %cst_23 {dimension_numbers = #tpu.dot_dimension_numbers<[1], [0], [0], [1], [0, 0, 1, 1], [], []>} : vector<8x256xbf16>, vector<256x64xbf16>, vector<8x64xf32> -> vector<8x64xf32>
    %52 = vector.extract_strided_slice %51 {offsets = [0, 0], sizes = [8, 32], strides = [1, 1]} : vector<8x64xf32> to vector<8x32xf32>
    %53 = vector.extract_strided_slice %0 {offsets = [5, 0], sizes = [1, 32], strides = [1, 1]} : vector<8x256xf32> to vector<1x32xf32>
    %54 = vector.broadcast %53 : vector<1x32xf32> to vector<8x32xf32>
    %55 = arith.addf %52, %54 : vector<8x32xf32>
    %c0_24 = arith.constant 0 : index
    %c0_25 = arith.constant 0 : index
    %56 = vector.load %arg6[%c0_24, %c0_25] : memref<8x32xf32, #tpu.memory_space<vmem>>, vector<8x32xf32>
    tpu.vector_store %arg6[%c0_24, %c0_25], %55 {strides = array<i32>} : memref<8x32xf32, #tpu.memory_space<vmem>>, vector<8x32xf32>,
    %cst_26 = arith.constant 1.000000e+00 : f32
    %57 = vector.broadcast %cst_26 : f32 to vector<8x1xf32>
    %c0_27 = arith.constant 0 : index
    %c0_28 = arith.constant 0 : index
    %58 = vector.load %arg7[%c0_27, %c0_28] : memref<8x1xf32, #tpu.memory_space<vmem>>, vector<8x1xf32>
    tpu.vector_store %arg7[%c0_27, %c0_28], %57 {strides = array<i32>} : memref<8x1xf32, #tpu.memory_space<vmem>>, vector<8x1xf32>,
    return
  }
}

</mosaic_0001>

<bundles_post_ra>
// kernel: icm_forward.1
= control target key start
LH: loop header
LB: loop body
LE: loop exit
PB: predicated region body
PF: predicated region fallthrough
CT: control target
= control target key end

     0   :  { %15 = vsyncpa [#allocation3], 0  ;;  %s1515_s0 = inlined_call_operand.vmem [shape: f32[8,16], index: 0, kind: input, shape index: {}]   ;;  %s1516_s1 = inlined_call_operand.vmem [shape: f32[8,16], index: 1, kind: input, shape index: {}]   ;;  %s1517_s2 = inlined_call_operand.vmem [shape: f32[8,1], index: 2, kind: input, shape index: {}]   ;;  %s1518_s3 = inlined_call_operand.vmem [shape: bf16[400,64], index: 3, kind: input, shape index: {}]   ;;  %s1519_s4 = inlined_call_operand.vmem [shape: bf16[288,256], index: 4, kind: input, shape index: {}]   ;;  %s1520_s5 = inlined_call_operand.vmem [shape: f32[8,256], index: 5, kind: input, shape index: {}]   ;;  %s1521_s6 = inlined_call_operand.hbm [shape: f32[8,32], index: 6, kind: output, shape index: {0}]   ;;  %s1522_s7 = inlined_call_operand.vmem [shape: f32[8,1], index: 7, kind: output, shape index: {1}]   ;;  %s1523_s8 = inlined_call_operand.hbm [shape: f32[8,32], index: 8, kind: output, shape index: {2}]   ;;  %s1524_s9 = inlined_call_operand.hbm [shape: f32[8,32], index: 9, kind: output, shape index: {3}]  }
   0x1   :  { %v961_v0 = vld [vmem:[%s1518_s3] sm:$0xff] }
   0x2   :  { %v32_v1 = vld [vmem:[%s1515_s0] sm:$0xff] }
   0x3   :  { %v33_v2 = vld [vmem:[%s1516_s1] sm:$0xff] }
   0x4   :  { %v36_v3 = vpack.c.bf16 %v33_v2, %v32_v1 }
   0x5   :  { %16 = vsyncpa [#allocation5], 0  ;;  %55 = vmatpush.bf16.msra.mxu0 %v961_v0  ;;  %vm44_vm0 = vcmask 130048   ;;  %v965_v4 = vld [vmem:[%s1518_s3 + $0x20] sm:$0xff]  ;;  %v964_v5 = vld [vmem:[%s1518_s3 + $0x18] sm:$0xff]  ;;  %vm98_vm1 = vcmask 523264  }
   0x6   :  { %106 = vmatpush.bf16.msra.mxu2 %v965_v4  ;;  %v963_v6 = vld [vmem:[%s1518_s3 + $0x10] sm:$0xff]  ;;  %v962_v7 = vld [vmem:[%s1518_s3 + $0x8] sm:$0xff]  ;;  %v1201_v8 = vld [vmem:[%s1520_s5] sm:$0xff]  ;;  %v1121_v25 = vmov 0   ;;  %vm173_vm2 = vcmask 261120   ;;  %s681_s19 = sshll.u32 %s1523_s8, 4  ;;  %s682_s19 = int_to_ptr.hbm [resolvable:$true] %s681_s19 }
   0x7   :  { %v37_v10 = vperm.slane %v1201_v8, 0  ;;  %v969_v17 = vld [vmem:[%s1518_s3 + $0x40] sm:$0xff]  ;;  %v968_v18 = vld [vmem:[%s1518_s3 + $0x38] sm:$0xff]  ;;  %v967_v19 = vld [vmem:[%s1518_s3 + $0x30] sm:$0xff]  ;;  %1028 = vset.pattern.permute.xlu0 %v1121_v25  ;;  %v73_v30 = vperm.slane %v1201_v8, 1  ;;  %v127_v55 = vperm.slane %v1201_v8, 2 }
   0x8   :  { %716 = vmatmul.msk.bf16.vlgmr.msra.gmra.mxu0 %vm44_vm0, %v36_v3  ;;  %v966_v20 = vld [vmem:[%s1518_s3 + $0x28] sm:$0xff]  ;;  %v761_v21 = vld [vmem:[%s1519_s4 + $0x10] sm:$0xf]  ;;  %v973_v22 = vld [vmem:[%s1519_s4 + $0x14] sm:$0xf0]  ;;  %s1123_s1 = smov [#allocation4]  }
   0x9   :  { %v180_v23 = vld [vmem:[%s1517_s2] sm:$0xff]  ;;  %v762_v24 = vor.u32 %v973_v22, %v761_v21  ;;  %v971_v27 = vld [vmem:[%s1519_s4 + $0x4] sm:$0xf0]  ;;  %v972_v37 = vld [vmem:[%s1519_s4 + $0x14] sm:$0xf]  ;;  %s1122_s2 = smov 96  }
   0xa   :  { %107 = vmatpush.bf16.msra.mxu2 %v964_v5  ;;  %v753_v26 = vld [vmem:[%s1519_s4] sm:$0xf]  ;;  %183 = vperm.xlu0 %1028, %v180_v23   ;;  %v763_v38 = vld [vmem:[%s1519_s4 + $0x18] sm:$0xf0]  ;;  %v970_v40 = vld [vmem:[%s1519_s4 + $0x4] sm:$0xf] }
   0xb   :  { %224 = vmatpush.bf16.msrb.mxu0 %v762_v24  ;;  %v754_v28 = vor.u32 %v971_v27, %v753_v26  ;;  %v766_v39 = vor.u32 %v972_v37, %v763_v38  ;;  %v755_v41 = vld [vmem:[%s1519_s4 + $0x8] sm:$0xf0]  ;;  %v827_v43 = vld [vmem:[%s1519_s4 + $0x90] sm:$0xf]  ;;  %v989_v44 = vld [vmem:[%s1519_s4 + $0x94] sm:$0xf0] }
   0xc   :  { %v758_v42 = vor.u32 %v970_v40, %v755_v41  ;;  %v828_v45 = vor.u32 %v989_v44, %v827_v43  ;;  %v988_v46 = vld [vmem:[%s1519_s4 + $0x94] sm:$0xf]  ;;  %v829_v47 = vld [vmem:[%s1519_s4 + $0x98] sm:$0xf0]  ;;  %v819_v49 = vld [vmem:[%s1519_s4 + $0x80] sm:$0xf] }
   0xd   :  { %v832_v48 = vor.u32 %v988_v46, %v829_v47  ;;  %v987_v50 = vld [vmem:[%s1519_s4 + $0x84] sm:$0xf0]  ;;  %v986_v51 = vld [vmem:[%s1519_s4 + $0x84] sm:$0xf]  ;;  %v821_v53 = vld [vmem:[%s1519_s4 + $0x88] sm:$0xf0] }
   0xe   :  { %108 = vmatpush.bf16.msra.mxu2 %v963_v6  ;;  %446 = vmatpush.bf16.msra.mxu3 %v828_v45  ;;  %v820_v52 = vor.u32 %v987_v50, %v819_v49  ;;  %v824_v54 = vor.u32 %v986_v51, %v821_v53  ;;  %v811_v61 = vld [vmem:[%s1519_s4 + $0x70] sm:$0xf]  ;;  %v985_v62 = vld [vmem:[%s1519_s4 + $0x74] sm:$0xf0]  ;;  %v984_v63 = vld [vmem:[%s1519_s4 + $0x74] sm:$0xf] }
   0xf   :  { %225 = vmatpush.bf16.msrb.mxu0 %v754_v28  ;;  %v812_v0 = vor.u32 %v985_v62, %v811_v61  ;;  %v813_v1 = vld [vmem:[%s1519_s4 + $0x78] sm:$0xf0]  ;;  %v803_v2 = vld [vmem:[%s1519_s4 + $0x60] sm:$0xf]  ;;  %v983_v3 = vld [vmem:[%s1519_s4 + $0x64] sm:$0xf0] }
  0x10   :  { %v816_v4 = vor.u32 %v984_v63, %v813_v1  ;;  %v982_v5 = vld [vmem:[%s1519_s4 + $0x64] sm:$0xf]  ;;  %v805_v6 = vld [vmem:[%s1519_s4 + $0x68] sm:$0xf0]  ;;  %v787_v22 = vld [vmem:[%s1519_s4 + $0x40] sm:$0xf] }
  0x11   :  { %v979_v23 = vld [vmem:[%s1519_s4 + $0x44] sm:$0xf0]  ;;  %v883_v24 = vld [vmem:[%s1519_s4 + $0x100] sm:$0xf]  ;;  %v978_v27 = vld [vmem:[%s1519_s4 + $0x44] sm:$0xf] }
  0x12   :  { %109 = vmatpush.bf16.msra.mxu2 %v962_v7  ;;  %447 = vmatpush.bf16.msra.mxu3 %v820_v52  ;;  %v804_v7 = vor.u32 %v983_v3, %v803_v2  ;;  %v788_v25 = vor.u32 %v979_v23, %v787_v22  ;;  %v1003_v26 = vld [vmem:[%s1519_s4 + $0x104] sm:$0xf0]  ;;  %v1001_v38 = vld [vmem:[%s1519_s4 + $0xf4] sm:$0xf0]  ;;  %v781_v40 = vld [vmem:[%s1519_s4 + $0x38] sm:$0xf0] }
  0x13   :  { %237 = vmatpush.bf16.msra.mxu0 %v766_v39  ;;  %v884_v28 = vor.u32 %v1003_v26, %v883_v24  ;;  %v976_v39 = vld [vmem:[%s1519_s4 + $0x34] sm:$0xf]  ;;  %v877_v44 = vld [vmem:[%s1519_s4 + $0xf8] sm:$0xf0]  ;;  %v771_v46 = vld [vmem:[%s1519_s4 + $0x20] sm:$0xf] }
  0x14   :  { %v1000_v43 = vld [vmem:[%s1519_s4 + $0xf4] sm:$0xf]  ;;  %v975_v47 = vld [vmem:[%s1519_s4 + $0x24] sm:$0xf0]  ;;  %v974_v52 = vld [vmem:[%s1519_s4 + $0x24] sm:$0xf] }
  0x15   :  { %v880_v45 = vor.u32 %v1000_v43, %v877_v44  ;;  %v772_v50 = vor.u32 %v975_v47, %v771_v46  ;;  %v999_v51 = vld [vmem:[%s1519_s4 + $0xe4] sm:$0xf0]  ;;  %v773_v53 = vld [vmem:[%s1519_s4 + $0x28] sm:$0xf0]  ;;  %v996_v61 = vld [vmem:[%s1519_s4 + $0xd4] sm:$0xf] }
  0x16   :  { %159 = vmatpush.bf16.msrb.mxu2 %v969_v17  ;;  %448 = vmatpush.bf16.msra.mxu3 %v812_v0  ;;  %v861_v63 = vld [vmem:[%s1519_s4 + $0xd8] sm:$0xf0]  ;;  %v851_v1 = vld [vmem:[%s1519_s4 + $0xc0] sm:$0xf]  ;;  %v995_v2 = vld [vmem:[%s1519_s4 + $0xc4] sm:$0xf0] }
  0x17   :  { %238 = vmatpush.bf16.msra.mxu0 %v758_v42  ;;  %v784_v42 = vor.u32 %v976_v39, %v781_v40  ;;  %v864_v0 = vor.u32 %v996_v61, %v861_v63  ;;  %v994_v3 = vld [vmem:[%s1519_s4 + $0xc4] sm:$0xf]  ;;  %v244_v26 = vperm.slane %v1201_v8, 3  ;;  %v1010_v47 = vld [vmem:[%s1518_s3 + $0x68] sm:$0xff]  ;;  %s679_s20 = sshll.u32 %s1123_s1, 4  ;;  %s1124_s23 = smov [#allocation6]   ;;  %s680_s20 = int_to_ptr.vmem [resolvable:$true] %s679_s20 }
  0x18   :  { %v1013_v24 = vld [vmem:[%s1518_s3 + $0x80] sm:$0xff]  ;;  %s690_s24 = sshll.u32 %s1124_s23, 4  ;;  %vm659_vm3 = vcmask 7168   ;;  %s1126_s8 = smov [#allocation2]   ;;  %s691_s24 = int_to_ptr.vmem [resolvable:$true] %s690_s24 }
  0x19   :  { %s666_s27 = sshll.u32 %s1126_s8, 4  ;;  %s667_s27 = int_to_ptr.vmem [resolvable:$true] %s666_s27 }
  0x1a   :  { %160 = vmatpush.bf16.msrb.mxu2 %v968_v18  ;;  %449 = vmatpush.bf16.msra.mxu3 %v804_v7 }
  0x1e   :  { %161 = vmatpush.bf16.msrb.mxu2 %v967_v19  ;;  %v1004_v19 = vld [vmem:[%s1519_s4 + $0x114] sm:$0xf] }
  0x22   :  { %162 = vmatpush.bf16.msrb.mxu2 %v966_v20  ;;  %v893_v20 = vld [vmem:[%s1519_s4 + $0x118] sm:$0xf0] }
  0x23   :  { %v896_v21 = vor.u32 %v1004_v19, %v893_v20  ;;  %v837_v20 = vld [vmem:[%s1519_s4 + $0xa8] sm:$0xf0] }
  0x7c   :  { %v1378_v49 = vpop.permute.xlu0 %183 }
  0x85   :  { %v57_v9 = vpop.f32.mrf.mxu0 }
  0x86   :  { %v58_v11 = vadd.f32 %v57_v9, %v37_v10  ;;  %v808_v9 = vor.u32 %v982_v5, %v805_v6  ;;  %v853_v5 = vld [vmem:[%s1519_s4 + $0xc8] sm:$0xf0] }
  0x87   :  { %v856_v6 = vor.u32 %v994_v3, %v853_v5 }
  0x88   :  { %1029 = vtanh.f32 %v58_v11  ;;  %v981_v11 = vld [vmem:[%s1519_s4 + $0x54] sm:$0xf0] }
  0x8d   :  { %v59_v12 = vpop.f32.mrf.mxu0 }
  0x8e   :  { %v60_v13 = vadd.f32 %v59_v12, %v37_v10  ;;  %v1030_v14 = vpop.eup %1029  ;;  %v795_v10 = vld [vmem:[%s1519_s4 + $0x50] sm:$0xf] }
  0x8f   :  { %v891_v12 = vld [vmem:[%s1519_s4 + $0x110] sm:$0xf] }
  0x90   :  { %1031 = vtanh.f32 %v60_v13  ;;  %v796_v13 = vor.u32 %v981_v11, %v795_v10  ;;  %v993_v10 = vld [vmem:[%s1519_s4 + $0xb4] sm:$0xf0] }
  0x92   :  { %450 = vmatpush.bf16.msra.mxu3 %v796_v13  ;;  %v845_v13 = vld [vmem:[%s1519_s4 + $0xb8] sm:$0xf0] }
  0x96   :  { %v1032_v15 = vpop.eup %1031  ;;  %451 = vmatpush.bf16.msra.mxu3 %v788_v25  ;;  %v1021_v25 = vld [vmem:[%s1518_s3 + $0xc0] sm:$0xff] }
  0x97   :  { %v72_v16 = vpack.c.bf16 %v1032_v15, %v1030_v14  ;;  %v1005_v14 = vld [vmem:[%s1519_s4 + $0x114] sm:$0xf0]  ;;  %v980_v15 = vld [vmem:[%s1519_s4 + $0x54] sm:$0xf] }
  0x98   :  { %v892_v17 = vor.u32 %v1005_v14, %v891_v12  ;;  %v992_v12 = vld [vmem:[%s1519_s4 + $0xb4] sm:$0xf] }
  0x99   :  { %733 = vmatmul.msk.bf16.vlgmr.msra.gmra.mxu2 %vm98_vm1, %v72_v16  ;;  %v797_v16 = vld [vmem:[%s1519_s4 + $0x58] sm:$0xf0]  ;;  %v848_v14 = vor.u32 %v992_v12, %v845_v13  ;;  %v1125_v12 = vmov 1.0  }
  0x9a   :  { %472 = vmatpush.bf16.msra.mxu2 %v832_v48  ;;  %v800_v18 = vor.u32 %v980_v15, %v797_v16  ;;  %459 = vmatpush.bf16.msra.mxu1 %v892_v17  ;;  %v867_v48 = vld [vmem:[%s1519_s4 + $0xe0] sm:$0xf]  ;;  %v991_v16 = vld [vmem:[%s1519_s4 + $0xa4] sm:$0xf0]  ;;  %v990_v17 = vld [vmem:[%s1519_s4 + $0xa4] sm:$0xf] }
  0x9b   :  { %v835_v15 = vld [vmem:[%s1519_s4 + $0xa0] sm:$0xf]  ;;  %660 = vst.msk [vmem:[%s1522_s7] sm:$0xff] %vm659_vm3, %v1125_v12 }
  0x9c   :  { %v836_v19 = vor.u32 %v991_v16, %v835_v15 }
  0x9e   :  { %473 = vmatpush.bf16.msra.mxu2 %v824_v54  ;;  %460 = vmatpush.bf16.msra.mxu1 %v884_v28  ;;  %v868_v54 = vor.u32 %v999_v51, %v867_v48  ;;  %v1012_v28 = vld [vmem:[%s1518_s3 + $0x78] sm:$0xff]  ;;  %v1018_v48 = vld [vmem:[%s1518_s3 + $0xa8] sm:$0xff] }
  0x9f   :  { %v1008_v51 = vld [vmem:[%s1518_s3 + $0x58] sm:$0xff] }
  0xa2   :  { %474 = vmatpush.bf16.msra.mxu2 %v816_v4  ;;  %v852_v4 = vor.u32 %v995_v2, %v851_v1 }
  0xa6   :  { %475 = vmatpush.bf16.msra.mxu2 %v808_v9  ;;  %v843_v9 = vld [vmem:[%s1519_s4 + $0xb0] sm:$0xf] }
  0xa7   :  { %v844_v11 = vor.u32 %v993_v10, %v843_v9 }
  0xaa   :  { %476 = vmatpush.bf16.msra.mxu2 %v800_v18  ;;  %v186_v18 = vperm.slane %v1201_v8, 6 }
  0xac   :  { %v188_v23 = vmul.f32 %v186_v18, %v1378_v49 }
 0x11c   :  { %v111_v29 = vpop.f32.mrf.mxu2 }
 0x11d   :  { %v112_v31 = vadd.f32 %v111_v29, %v73_v30  ;;  %v789_v29 = vld [vmem:[%s1519_s4 + $0x48] sm:$0xf0] }
 0x11f   :  { %1033 = vtanh.f32 %v112_v31  ;;  %v885_v31 = vld [vmem:[%s1519_s4 + $0x108] sm:$0xf0] }
 0x124   :  { %v113_v32 = vpop.f32.mrf.mxu2 }
 0x125   :  { %v114_v33 = vadd.f32 %v113_v32, %v73_v30  ;;  %v1034_v34 = vpop.eup %1033  ;;  %v1002_v30 = vld [vmem:[%s1519_s4 + $0x104] sm:$0xf]  ;;  %v792_v32 = vor.u32 %v978_v27, %v789_v29  ;;  %v1020_v29 = vld [vmem:[%s1518_s3 + $0xb8] sm:$0xff] }
 0x127   :  { %1035 = vtanh.f32 %v114_v33  ;;  %v888_v33 = vor.u32 %v1002_v30, %v885_v31  ;;  %477 = vmatpush.bf16.msra.mxu2 %v792_v32  ;;  %v1011_v32 = vld [vmem:[%s1518_s3 + $0x70] sm:$0xff] }
 0x12b   :  { %478 = vmatpush.bf16.msra.mxu2 %v784_v42 }
 0x12d   :  { %v1036_v35 = vpop.eup %1035 }
 0x12e   :  { %v126_v36 = vpack.c.bf16 %v1036_v35, %v1034_v34  ;;  %v779_v34 = vld [vmem:[%s1519_s4 + $0x30] sm:$0xf]  ;;  %v977_v35 = vld [vmem:[%s1519_s4 + $0x34] sm:$0xf0] }
 0x12f   :  { %v780_v37 = vor.u32 %v977_v35, %v779_v34  ;;  %v31_v34 = vld [vmem:[%s1520_s5 + $0x8] sm:$0xff]  ;;  %s692_s5 = sshll.u32 %s1524_s9, 4  ;;  %s668_s9 = sshll.u32 %s1521_s6, 4  ;;  %s693_s5 = int_to_ptr.hbm [resolvable:$true] %s692_s5  ;;  %s669_s9 = int_to_ptr.hbm [resolvable:$true] %s668_s9 }
 0x130   :  { %750 = vmatmul.msk.bf16.vlgmr.msrb.gmra.mxu2 %vm98_vm1, %v126_v36  ;;  %v875_v36 = vld [vmem:[%s1519_s4 + $0xf0] sm:$0xf]  ;;  %v245_v40 = vperm.slane %v31_v34, 3 }
 0x131   :  { %v876_v41 = vor.u32 %v1001_v38, %v875_v36  ;;  %452 = vmatpush.bf16.msra.mxu3 %v780_v37  ;;  %v187_v37 = vperm.slane %v31_v34, 6 }
 0x133   :  { %461 = vmatpush.bf16.msra.mxu1 %v876_v41  ;;  %v189_v39 = vmul.f32 %v187_v37, %v1378_v49  ;;  %v1009_v49 = vld [vmem:[%s1518_s3 + $0x60] sm:$0xff] }
 0x135   :  { %453 = vmatpush.bf16.msra.mxu3 %v772_v50  ;;  %v1017_v50 = vld [vmem:[%s1518_s3 + $0xa0] sm:$0xff] }
 0x137   :  { %462 = vmatpush.bf16.msra.mxu1 %v868_v54  ;;  %v1015_v54 = vld [vmem:[%s1518_s3 + $0x90] sm:$0xff] }
 0x139   :  { %630 = vmatpush.bf16.msrb.mxu3 %v1013_v24 }
 0x13d   :  { %631 = vmatpush.bf16.msrb.mxu3 %v1012_v28 }
 0x141   :  { %632 = vmatpush.bf16.msrb.mxu3 %v1011_v32 }
 0x145   :  { %633 = vmatpush.bf16.msrb.mxu3 %v1010_v47 }
 0x149   :  { %634 = vmatpush.bf16.msrb.mxu3 %v1009_v49 }
 0x14d   :  { %635 = vmatpush.bf16.msrb.mxu3 %v1008_v51 }
 0x1b3   :  { %v164_v56 = vpop.f32.mrf.mxu2 }
 0x1b4   :  { %v165_v57 = vadd.f32 %v164_v56, %v127_v55  ;;  %v998_v56 = vld [vmem:[%s1519_s4 + $0xe4] sm:$0xf] }
 0x1b6   :  { %v194_v58 = vpack.c.bf16 %v165_v57, %v165_v57  ;;  %170 = vrot.lane.b32.xlu0 %v165_v57, %s1122_s2  ;;  %v869_v57 = vld [vmem:[%s1519_s4 + $0xe8] sm:$0xf0] }
 0x1b8   :  { %767 = vmatmul.msk.bf16.vlgmr.msrb.gmra.mxu0 %vm173_vm2, %v194_v58 }
 0x1b9   :  { %485 = vmatpush.bf16.msrb.mxu0 %v896_v21  ;;  %v840_v21 = vor.u32 %v990_v17, %v837_v20 }
 0x1bb   :  { %v166_v59 = vpop.f32.mrf.mxu2 }
 0x1bc   :  { %v167_v60 = vadd.f32 %v166_v59, %v127_v55  ;;  %v776_v55 = vor.u32 %v974_v52, %v773_v53  ;;  %v859_v59 = vld [vmem:[%s1519_s4 + $0xd0] sm:$0xf]  ;;  %v1016_v52 = vld [vmem:[%s1518_s3 + $0x98] sm:$0xff] }
 0x1bd   :  { %486 = vmatpush.bf16.msrb.mxu0 %v888_v33  ;;  %v1019_v33 = vld [vmem:[%s1518_s3 + $0xb0] sm:$0xff] }
 0x1be   :  { %176 = vrot.lane.b32.xlu1 %v167_v60, %s1122_s2  ;;  %v997_v60 = vld [vmem:[%s1519_s4 + $0xd4] sm:$0xf0]  ;;  %479 = vmatpush.bf16.msra.mxu2 %v776_v55  ;;  %v1007_v53 = vld [vmem:[%s1518_s3 + $0x50] sm:$0xff]  ;;  %v1006_v55 = vld [vmem:[%s1518_s3 + $0x48] sm:$0xff] }
 0x1bf   :  { %v860_v62 = vor.u32 %v997_v60, %v859_v59  ;;  %636 = vmatpush.bf16.msrb.mxu3 %v1007_v53  ;;  %v284_v59 = vperm.slane %v1201_v8, 4  ;;  %v285_v60 = vperm.slane %v31_v34, 4 }
 0x1c1   :  { %487 = vmatpush.bf16.msrb.mxu0 %v880_v45  ;;  %463 = vmatpush.bf16.msra.mxu1 %v860_v62 }
 0x1c3   :  { %637 = vmatpush.bf16.msrb.mxu3 %v1006_v55 }
 0x1c5   :  { %464 = vmatpush.bf16.msra.mxu1 %v852_v4 }
 0x1c8   :  { %768 = vmatmul.msk.bf16.vlgmr.msra.gmra.mxu0 %vm173_vm2, %v194_v58  ;;  %v872_v58 = vor.u32 %v998_v56, %v869_v57  ;;  %v1014_v56 = vld [vmem:[%s1518_s3 + $0x88] sm:$0xff] }
 0x1c9   :  { %465 = vmatpush.bf16.msra.mxu1 %v844_v11 }
 0x1ca   :  { %488 = vmatpush.bf16.msrb.mxu0 %v872_v58 }
 0x1cd   :  { %466 = vmatpush.bf16.msra.mxu1 %v836_v19 }
 0x1ce   :  { %489 = vmatpush.bf16.msrb.mxu0 %v864_v0 }
 0x1d1   :  { %643 = vmatpush.bf16.msrb.mxu1 %v1021_v25 }
 0x1d2   :  { %490 = vmatpush.bf16.msrb.mxu0 %v856_v6 }
 0x1d5   :  { %644 = vmatpush.bf16.msrb.mxu1 %v1020_v29 }
 0x1d6   :  { %491 = vmatpush.bf16.msrb.mxu0 %v848_v14  ;;  %v656_v14 = vperm.slane %v1201_v8, 5 }
 0x1d9   :  { %645 = vmatpush.bf16.msrb.mxu1 %v1019_v33 }
 0x1da   :  { %492 = vmatpush.bf16.msrb.mxu0 %v840_v21 }
 0x1dd   :  { %646 = vmatpush.bf16.msrb.mxu1 %v1018_v48 }
 0x1e1   :  { %647 = vmatpush.bf16.msrb.mxu1 %v1017_v50 }
 0x1e5   :  { %648 = vmatpush.bf16.msrb.mxu1 %v1016_v52 }
 0x1e9   :  { %649 = vmatpush.bf16.msrb.mxu1 %v1015_v54 }
 0x1ed   :  { %650 = vmatpush.bf16.msrb.mxu1 %v1014_v56 }
 0x228   :  { %v171_v7 = vpop.permute.xlu0 %170 }
 0x229   :  { %174 = vst.msk [vmem:[#allocation4] sm:$0xff] %vm173_vm2, %v171_v7 }
 0x22a   :  { %684 = dma.vmem_to_hbm [thread:$0]  %s680_s20, 128, %s682_s19, [#allocation5]  }
 0x230   :  { %v177_v22 = vpop.permute.xlu1 %176 }
 0x231   :  { %179 = vst.msk [vmem:[#allocation6] sm:$0xff] %vm173_vm2, %v177_v22 }
 0x232   :  { %695 = dma.vmem_to_hbm [thread:$0]  %s691_s24, 128, %s693_s5, [#allocation5]  }
 0x235   :  { %v227_v27 = vpop.f32.mrf.mxu0 }
 0x236   :  { %v228_v30 = vadd.f32 %v227_v27, %v188_v23 }
 0x238   :  { %v246_v31 = vadd.f32 %v244_v26, %v228_v30 }
 0x23a   :  { %1037 = vtanh.f32 %v246_v31 }
 0x23d   :  { %v229_v35 = vpop.f32.mrf.mxu0 }
 0x240   :  { %v1038_v36 = vpop.eup %1037 }
 0x241   :  { %v282_v38 = vpack.c.bf16 %v1038_v36, %v1038_v36 }
 0x243   :  { %454 = vmatmul.bf16.vlgmr.msra.gmra.mxu3 %v282_v38  ;;  %480 = vmatmul.bf16.vlgmr.msra.gmra.mxu2 %v282_v38 }
 0x245   :  { %v240_v41 = vpop.f32.mrf.mxu0 }
 0x246   :  { %v241_v42 = vadd.f32 %v240_v41, %v189_v39 }
 0x248   :  { %v247_v43 = vadd.f32 %v245_v40, %v241_v42 }
 0x24a   :  { %1039 = vtanh.f32 %v247_v43 }
 0x24d   :  { %v242_v44 = vpop.f32.mrf.mxu0 }
 0x250   :  { %v1040_v45 = vpop.eup %1039 }
 0x251   :  { %v283_v46 = vpack.c.bf16 %v1040_v45, %v1040_v45 }
 0x253   :  { %467 = vmatmul.bf16.vlgmr.msra.gmra.mxu1 %v283_v46  ;;  %493 = vmatmul.bf16.vlgmr.msrb.gmra.mxu0 %v283_v46 }
 0x2c6   :  { %v455_v57 = vpop.f32.mrf.mxu3  ;;  %v481_v58 = vpop.f32.mrf.mxu2 }
 0x2c7   :  { %v456_v63 = vadd.f32 %v455_v57, %v284_v59  ;;  %v482_v0 = vadd.f32 %v481_v58, %v285_v60 }
 0x2ce   :  { %v457_v61 = vpop.f32.mrf.mxu3  ;;  %v483_v62 = vpop.f32.mrf.mxu2 }
 0x2d0   :  { %v468_v1 = vpop.f32.mrf.mxu1  ;;  %v494_v2 = vpop.f32.mrf.mxu0 }
 0x2d1   :  { %v469_v3 = vadd.f32 %v468_v1, %v456_v63  ;;  %v495_v4 = vadd.f32 %v494_v2, %v482_v0 }
 0x2d3   :  { %1041 = vtanh.f32 %v469_v3 }
 0x2d4   :  { %1043 = vtanh.f32 %v495_v4 }
 0x2d8   :  { %v470_v5 = vpop.f32.mrf.mxu1  ;;  %v496_v6 = vpop.f32.mrf.mxu0 }
 0x2d9   :  { %v1042_v7 = vpop.eup %1041 }
 0x2da   :  { %v1044_v9 = vpop.eup %1043  ;;  %v532_v10 = vpack.c.bf16 %v1042_v7, %v1042_v7 }
 0x2db   :  { %v533_v11 = vpack.c.bf16 %v1044_v9, %v1044_v9 }
 0x2dc   :  { %638 = vmatmul.bf16.vlgmr.msrb.gmra.mxu3 %v532_v10 }
 0x2dd   :  { %651 = vmatmul.bf16.vlgmr.msrb.gmra.mxu1 %v533_v11 }
 0x35a   :  { %v652_v13 = vpop.f32.mrf.mxu1 }
 0x35f   :  { %v639_v15 = vpop.f32.mrf.mxu3 }
 0x360   :  { %v653_v16 = vadd.f32 %v652_v13, %v639_v15 }
 0x362   :  { %v657_v17 = vadd.f32 %v656_v14, %v653_v16  ;;  %v654_v18 = vpop.f32.mrf.mxu1 }
 0x364   :  { %658 = vst.msk [vmem:[#allocation2] sm:$0xff] %vm173_vm2, %v657_v17 }
 0x365   :  { %671 = dma.vmem_to_hbm [thread:$0]  %s667_s27, 128, %s669_s9, [#allocation3]  }
 0x367   :  { %v641_v19 = vpop.f32.mrf.mxu3 }
 0x368   :  { %1117 = dma.done.wait [#allocation3], 128  }
 0x369   :  { %1118 = vsyncadd [#allocation3], 4294967168 }
 0x36a   :  { %1119 = dma.done.wait [#allocation5], 256  }
 0x36b   :  { %1120 = vsyncadd [#allocation5], 4294967040 }
 0x36c   :  { %710 = vsyncpa [#allocation3], 1 }
 0x36d   :  { %711 = vsyncpa [#allocation5], 1 }

</bundles_post_ra>
